<compile_context>
chip_gen: v7x
topology: tpu7x:2x2x1
jax: 0.10.0
libtpu: 0.0.40
codegen_flags: <defaults>
</compile_context>

<pallas_src>
import math

import jax
import jax.numpy as jnp
from jax.experimental import pallas as pl
from jax.experimental.pallas import tpu as pltpu


def _expand_as_kernel(a_ref, o_ref):
    # a_ref: (1, col_tile) source row; o_ref: (row_tile, col_tile) output tile.
    # Sublane broadcast of one lane-dense row across the tile; the kernel is
    # HBM-writeback bound, no compute tuning needed (dtypes match by
    # construction, so no astype).
    o_ref[...] = jnp.broadcast_to(a_ref[...], o_ref.shape)


# Per-output-block VMEM budget. Double-buffered output => ~12 MiB, which fits
# under v5e's ~16 MiB scoped-VMEM default (and trivially under v6e/v7x) while
# keeping per-grid-step overhead (~0.35 us) amortized over multi-MiB DMAs.
_BLOCK_BUDGET_BYTES = 6 * 1024 * 1024


def _pick_tiles(M, N, dtype):
    """Pick (row_tile, col_tile) for the output block from the byte budget."""
    itemsize = jnp.dtype(dtype).itemsize
    packing = max(1, 4 // itemsize)          # sublane packing (f32:1, bf16:2, int8:4)
    row_q = 8 * packing                      # row quantum
    lane_q = 128                              # lane quantum

    # Column-tile fallback: even a minimal-height full-N block is over budget.
    if N * itemsize * row_q > _BLOCK_BUDGET_BYTES:
        col_tile = max(lane_q,
                       (_BLOCK_BUDGET_BYTES // (row_q * itemsize)) // lane_q * lane_q)
        return row_q, col_tile

    # Full-N (lane-dense) blocks; byte budget alone drives the row tile
    # (no artificial row cap).
    col_tile = N
    max_rows = max(row_q,
                   (_BLOCK_BUDGET_BYTES // max(1, N * itemsize)) // row_q * row_q)
    return max_rows, col_tile


def _maybe_widen(a, M, N):
    """Fold rows so the last dim becomes a multiple of 128 (exact for a broadcast).

    Returns (a_wide, M2, N2, fold). fold == 1 means no widening was possible.
    """
    if N % 128 == 0 or M <= 1:
        return a, M, N, 1
    k = 128 // math.gcd(N, 128)              # smallest k with (k*N) % 128 == 0
    if k <= 1 or (M % k) != 0:
        return a, M, N, 1                     # can't fold cleanly; masked-store fallback
    a_wide = jnp.tile(a, (1, k))              # all output rows are identical, so exact
    return a_wide, M // k, N * k, k


def _row_axis_semantics(grid_rows):
    """CORE_PARALLEL on v7x (2 TCs share the writeback); PARALLEL elsewhere."""
    try:
        kind = jax.devices()[0].device_kind.lower()
    except Exception:  # pragma: no cover - defensive
        kind = ""
    if "v7" in kind and grid_rows > 1 and grid_rows % 2 == 0:
        return pltpu.CORE_PARALLEL
    return pltpu.PARALLEL


def expand_as(a, target_shape, *, row_tile=None, col_tile=None):
    """Broadcast `a` (shape (1, N)) to `target_shape` (shape (M, N)) on TPU."""
    M, N = target_shape
    assert a.shape == (1, N), f"expected a of shape (1, {N}), got {a.shape}"
    # TODO(synk): general expand_as patterns ((M,1)->(M,N), scalars, higher-rank
    # leading broadcast dims) are not implemented; only the row-broadcast case
    # exercised by the test.

    itemsize = jnp.dtype(a.dtype).itemsize

    # Lane-dense widening for N not a multiple of 128 (exact; rows identical).
    a_run, M2, N2, fold = _maybe_widen(a, M, N)

    auto_rt, auto_ct = _pick_tiles(M2, N2, a.dtype)
    if row_tile is None:
        row_tile = auto_rt
    if col_tile is None:
        col_tile = auto_ct

    # Full-extent blocks are always legal; otherwise keep (8,128) quanta and
    # let the cdiv grid mask the partial last tiles.
    if row_tile >= M2:
        row_tile = M2
    if col_tile >= N2:
        col_tile = N2

    grid = (pl.cdiv(M2, row_tile), pl.cdiv(N2, col_tile))

    # Explicit scoped-VMEM limit: 2x double-buffered output + 2x input + slack.
    out_block_bytes = row_tile * col_tile * itemsize
    in_block_bytes = col_tile * itemsize
    needed = 2 * out_block_bytes + 2 * in_block_bytes + (2 << 20)
    vmem_limit = int(min(max(needed, 16 << 20), 48 << 20))

    cost = pl.CostEstimate(
        flops=0,
        transcendentals=0,
        bytes_accessed=M * N * itemsize + N * itemsize,
    )

    out_wide = pl.pallas_call(
        _expand_as_kernel,
        out_shape=jax.ShapeDtypeStruct((M2, N2), a.dtype),
        grid_spec=pltpu.PrefetchScalarGridSpec(
            num_scalar_prefetch=0,
            grid=grid,
            in_specs=[
                # Constant-in-i index map: the (1, col_tile) source row stays
                # resident across the whole row axis (re-DMA only when the
                # column block changes).
                pl.BlockSpec((1, col_tile), lambda i, j: (0, j)),
            ],
            # Lane-dense output tile: big row tile, 128-multiple (or full-N)
            # column tile -> wide unmasked vst + large writeback DMAs.
            out_specs=pl.BlockSpec((row_tile, col_tile), lambda i, j: (i, j)),
        ),
        compiler_params=pltpu.CompilerParams(
            dimension_semantics=(_row_axis_semantics(grid[0]), pltpu.ARBITRARY),
            vmem_limit_bytes=vmem_limit,
        ),
        cost_estimate=cost,
    )(a_run)

    if fold == 1:
        return out_wide
    # Row-major reshape back to the requested shape (free for a contiguous
    # array; exact because every output row equals `a`).
    return out_wide.reshape(M, N)


# TODO(synk): if the expanded tensor feeds another kernel, fuse the broadcast
# into the consumer (keep the (1, N) row resident in VMEM) instead of
# materializing M*N bytes in HBM; that is the real system-level win.


if __name__ == "__main__":
    key = jax.random.PRNGKey(0)
    k_other, k_a = jax.random.split(key)

    # Deterministic stand-in for torch.randn(shape) in __init__ — only its
    # shape participates in the computation.
    other_shape = (16, 128)
    other = jax.random.normal(k_other, other_shape, dtype=jnp.float32)
    a = jax.random.normal(k_a, (1, other_shape[1]), dtype=jnp.float32)

    # 1) Auto-tiled path: small target collapses to a single full-block DMA.
    out = jax.block_until_ready(expand_as(a, other.shape))
    assert out.shape == other.shape and out.dtype == a.dtype
    assert bool(jnp.array_equal(out, jnp.broadcast_to(a, other.shape)))

    # 2) Non-multiple-of-8 row count, cdiv grid with a masked partial last tile.
    out2 = jax.block_until_ready(expand_as(a, (20, 128), row_tile=8))
    assert bool(jnp.array_equal(out2, jnp.broadcast_to(a, (20, 128))))

    # 3) Column-tiled path (2D grid) exercising the huge-N fallback machinery.
    a3 = jax.random.normal(k_a, (1, 512), dtype=jnp.float32)
    out3 = jax.block_until_ready(expand_as(a3, (24, 512), row_tile=8, col_tile=256))
    assert bool(jnp.array_equal(out3, jnp.broadcast_to(a3, (24, 512))))

    # 4) N not a multiple of 128, M folds cleanly -> lane-dense widened layout.
    a4 = jax.random.normal(k_a, (1, 20), dtype=jnp.float32)
    out4 = jax.block_until_ready(expand_as(a4, (32, 20)))
    assert bool(jnp.array_equal(out4, jnp.broadcast_to(a4, (32, 20))))

    # 5) N not a multiple of 128 and M not foldable -> masked-store fallback.
    out5 = jax.block_until_ready(expand_as(a4, (18, 20)))
    assert bool(jnp.array_equal(out5, jnp.broadcast_to(a4, (18, 20))))

    print("KERNEL_OK")
</pallas_src>

<mosaic_0001>
module attributes {stable_mosaic.version = 11 : i64} {
  func.func @_expand_as_kernel(%arg0: i32, %arg1: i32, %arg2: memref<1x128xf32, #tpu.memory_space<vmem>>, %arg3: memref<16x128xf32, #tpu.memory_space<vmem>>) attributes {dimension_semantics = [#tpu.dimension_semantics<parallel>, #tpu.dimension_semantics<arbitrary>], iteration_bounds = array<i64: 1, 1>, scalar_prefetch = 0 : i64, scratch_operands = 0 : i64, tpu.core_type = #tpu.core_type<tc>, window_params = [{transform_indices = @transform_0, window_bounds = array<i64: 1, 128>}, {transform_indices = @transform_1, window_bounds = array<i64: 16, 128>}]} {
    %c0 = arith.constant 0 : index
    %c0_0 = arith.constant 0 : index
    %0 = vector.load %arg2[%c0, %c0_0] : memref<1x128xf32, #tpu.memory_space<vmem>>, vector<1x128xf32>
    %1 = vector.shape_cast %0 : vector<1x128xf32> to vector<1x128xf32>
    %2 = vector.broadcast %1 : vector<1x128xf32> to vector<16x128xf32>
    %c0_1 = arith.constant 0 : index
    %c0_2 = arith.constant 0 : index
    %3 = vector.load %arg3[%c0_1, %c0_2] : memref<16x128xf32, #tpu.memory_space<vmem>>, vector<16x128xf32>
    tpu.vector_store %arg3[%c0_1, %c0_2], %2 {strides = array<i32>} : memref<16x128xf32, #tpu.memory_space<vmem>>, vector<16x128xf32>,
    return
  }
  func.func @transform_0(%arg0: i32, %arg1: i32) -> (i32, i32) {
    %c0_i32 = arith.constant 0 : i32
    %c0_i32_0 = arith.constant 0 : i32
    return %c0_i32, %arg1 : i32, i32
  }
  func.func @transform_1(%arg0: i32, %arg1: i32) -> (i32, i32) {
    %c0_i32 = arith.constant 0 : i32
    return %arg0, %arg1 : i32, i32
  }
}

</mosaic_0001>

<bundles_post_ra>
// kernel: tpu_custom_call.1
= control target key start
LH: loop header
LB: loop body
LE: loop exit
PB: predicated region body
PF: predicated region fallthrough
CT: control target
= control target key end

     0   :  { %6 = vsyncpa [#allocation3], 0  ;;  %s138_s0 = inlined_call_operand.hbm [shape: f32[1,128], index: 0, kind: input, shape index: {}]   ;;  %s139_s1 = inlined_call_operand.hbm [shape: f32[16,128], index: 1, kind: output, shape index: {}]  }
   0x1   :  { %7 = vsyncpa [#allocation4], 0  ;;  %s100_s6 = smov [#allocation2]   ;;  %s52_s10 = scalar_lea.hbm %s138_s0, 16 }
   0x2   :  { %s14_s7 = sshll.u32 %s100_s6, 4  ;;  %p53_p0 = scmp.ne.s32.totalorder %s138_s0, %s52_s10  ;;  %s15_s7 = int_to_ptr.vmem [resolvable:$true] %s14_s7 }
   0x3   :  { %p56_p1 = scmp.lt.u32.totalorder %s52_s10, %s138_s0 }
   0x5   :  { %p58_p2 = pnand %p56_p1, %p53_p0 }
   0x7   :  { %61 = shalt.err (!%p58_p2)
}
   0x8   :  { %s62_s15 = scalar_lea.vmem %s15_s7, 16  ;;  %s66_s16 = scalar_lea.vmem %s15_s7, 32 }
   0x9   :  { %p63_p3 = scmp.ne.s32.totalorder %s15_s7, %s62_s15  ;;  %p67_p4 = scmp.lt.s32.totalorder %s15_s7, %s15_s7 }
   0xa   :  { %p68_p5 = scmp.lt.s32.totalorder %s66_s16, %s62_s15 }
   0xc   :  { %p69_p6 = por %p68_p5, %p67_p4 }
   0xe   :  { %p70_p7 = pnand %p69_p6, %p63_p3 }
  0x10   :  { %73 = shalt.err (!%p70_p7)
}
  0x11   :  { %17 = dma.hbm_to_vmem [thread:$0]  %s138_s0, 16, %s15_s7, [#allocation3]  }
  0x12   :  { %96 = dma.done.wait [#allocation3], 16  }
  0x13   :  { %97 = vsyncadd [#allocation3], 4294967280  ;;  %s101_s19 = smov [#allocation5]   ;;  %v47_v0 = vld [vmem:[#allocation2] ss:$0 sm:$0xff] }
  0x14   :  { %s35_s20 = sshll.u32 %s101_s19, 4  ;;  %28 = vst [vmem:[#allocation5] sm:$0xff] %v47_v0  ;;  %29 = vst [vmem:[#allocation5 + $0x8] sm:$0xff] %v47_v0  ;;  %s36_s20 = int_to_ptr.vmem [resolvable:$true] %s35_s20 }
  0x15   :  { %s74_s21 = scalar_lea.vmem %s36_s20, 256  ;;  %p79_p9 = scmp.lt.s32.totalorder %s36_s20, %s36_s20 }
  0x16   :  { %p75_p8 = scmp.ne.s32.totalorder %s36_s20, %s74_s21  ;;  %p80_p10 = scmp.lt.s32.totalorder %s74_s21, %s74_s21 }
  0x18   :  { %p81_p11 = por %p80_p10, %p79_p9 }
  0x1a   :  { %p82_p12 = pnand %p81_p11, %p75_p8 }
  0x1c   :  { %85 = shalt.err (!%p82_p12)
}
  0x1d   :  { %s86_s24 = scalar_lea.hbm %s139_s1, 256 }
  0x1e   :  { %p87_p13 = scmp.ne.s32.totalorder %s139_s1, %s86_s24  ;;  %p90_p0 = scmp.lt.u32.totalorder %s86_s24, %s139_s1 }
  0x20   :  { %p92_p1 = pnand %p90_p0, %p87_p13 }
  0x22   :  { %95 = shalt.err (!%p92_p1)
}
  0x23   :  { %s102_s28 = smov 128   ;;  %s103_s29 = smov 8  }
  0x24   :  { %41 = dma.vmem_to_hbm [thread:$0]  %s36_s20, 256, %s139_s1, [#allocation4], %s102_s28, %s102_s28, %s103_s29  }
  0x25   :  { %98 = dma.done.wait [#allocation4], 256  }
  0x26   :  { %99 = vsyncadd [#allocation4], 4294967040 }
  0x27   :  { %45 = vsyncpa [#allocation3], 1 }
  0x28   :  { %46 = vsyncpa [#allocation4], 1 }

</bundles_post_ra>
